<compile_context>
chip_gen: v7x
topology: tpu7x:2x2x1
jax: 0.10.0
libtpu: 0.0.40
codegen_flags: <defaults>
</compile_context>

<pallas_src>
import functools
import math

import jax
import jax.numpy as jnp
from jax.experimental import pallas as pl
from jax.experimental.pallas import tpu as pltpu


def _round_up(x, m):
    return ((x + m - 1) // m) * m


def _embed_gather_kernel(ids_ref, lut_hbm, out_ref, sems, *,
                         scale, tokens_per_block, chunk, vocab):
    """Gather one (tb, d) block of embedding rows straight into the output tile.

    ids_ref : SMEM (n_pad,) int32   -- scalar-prefetched token ids
    lut_hbm : ANY/HBM (vocab, d)    -- embedding table (never copied whole)
    out_ref : VMEM (tb, d)          -- output tile; DMA destination AND target
                                       of the in-place scaled store
    sems    : DMA sems (2, chunk)   -- two banks => up to 2*chunk rows in flight
    """
    base = pl.program_id(0) * tokens_per_block
    n_chunks = tokens_per_block // chunk

    def _row_copy(src_row, dst_row, bank, slot):
        # The same descriptor shape is used for .start() and .wait(); the wait
        # only needs the matching byte count + semaphore slot (every row moves
        # identical bytes), so src_row is irrelevant for the wait.
        return pltpu.make_async_copy(
            lut_hbm.at[pl.ds(src_row, 1), :],
            out_ref.at[pl.ds(dst_row, 1), :],
            sems.at[bank, slot],
        )

    def issue_chunk(c):
        bank, start = c % 2, c * chunk
        # Fully unrolled: descriptor issue is scalar / vector-misc slot bound,
        # so per-row loop overhead matters.
        for i in range(chunk):
            # Bounds-safe gather: clamp ids so the DMA can never read OOB.
            tok = jnp.clip(ids_ref[base + start + i], 0, vocab - 1)
            _row_copy(tok, start + i, bank, i).start()

    def retire_chunk(c):
        bank, start = c % 2, c * chunk
        for i in range(chunk):
            _row_copy(0, start + i, bank, i).wait()
        # In-place scale of the retired sub-slab, in the table's native dtype.
        # Overlaps the VPU work with the next chunk's DMAs already in flight.
        out_ref[pl.ds(start, chunk), :] = (
            out_ref[pl.ds(start, chunk), :] * scale
        ).astype(out_ref.dtype)

    # Software pipeline at chunk granularity: prologue, then issue(c+1) before
    # retiring c so there is always a chunk of DMAs in flight.
    issue_chunk(0)
    for c in range(n_chunks):
        if c + 1 < n_chunks:
            issue_chunk(c + 1)
        retire_chunk(c)


def embeddings_forward(x, lut, *, tokens_per_block=256, chunk_rows=32):
    """Equivalent of `Embeddings.forward`: lut[x] * sqrt(d_model)."""
    batch, seq = x.shape
    vocab, d_model = lut.shape
    n = batch * seq
    elt = jnp.dtype(lut.dtype).itemsize
    row_bytes = d_model * elt

    # ---- block geometry -----------------------------------------------------
    n8 = _round_up(n, 8)
    tb = min(tokens_per_block, n8)

    # Keep the output tile <= ~20 MiB: it is double-buffered by the pipeline,
    # so 2x tile + headroom stays well under v7x's 64 MiB/TC VMEM (and
    # trivially under 128 MiB on v5e/v6e).
    tb_cap = max(8, (20 << 20) // row_bytes)
    tb = min(tb, tb_cap)

    # v7x megacore: make sure the "parallel" grid axis has >= 2 blocks when
    # there is enough work, so both TensorCores get a share.
    if n8 // max(tb, 1) < 2 and n8 >= 16:
        tb = (n8 + 1) // 2
    tb = max(8, _round_up(tb, 8))

    # chunk = unit of DMA issue / retire+scale overlap (2 banks in flight).
    chunk = min(chunk_rows, tb)
    chunk = max(8, (chunk // 8) * 8)
    tb = _round_up(tb, chunk)

    n_pad = _round_up(n, tb)
    grid = n_pad // tb

    # Pad with token 0 (always a valid row); padded rows are sliced off below
    # (a no-op whenever tb divides batch*seq).
    ids = jnp.pad(x.reshape(n).astype(jnp.int32), (0, n_pad - n))
    scale = float(math.sqrt(d_model))

    kernel = functools.partial(
        _embed_gather_kernel,
        scale=scale,
        tokens_per_block=tb,
        chunk=chunk,
        vocab=vocab,
    )

    grid_spec = pltpu.PrefetchScalarGridSpec(
        num_scalar_prefetch=1,                       # ids land in SMEM
        grid=(grid,),
        in_specs=[
            pl.BlockSpec(memory_space=pl.ANY),       # table stays in HBM
        ],
        out_specs=pl.BlockSpec((tb, d_model), lambda i, ids: (i, 0)),
        scratch_shapes=[
            pltpu.SemaphoreType.DMA((2, chunk)),     # 2 banks of per-row sems
        ],
    )

    # Explicit VMEM budget: double-buffered output tile + headroom, capped at
    # 48 MiB so Mosaic keeps internal scratch headroom even on v7x (64 MiB/TC).
    vmem_bytes = 2 * tb * d_model * elt + (4 << 20)
    vmem_bytes = int(min(max(vmem_bytes, 8 << 20), 48 << 20))

    out_flat = pl.pallas_call(
        kernel,
        out_shape=jax.ShapeDtypeStruct((n_pad, d_model), lut.dtype),
        grid_spec=grid_spec,
        compiler_params=pltpu.CompilerParams(
            # Each block writes an independent output tile -> megacore-shardable.
            dimension_semantics=("parallel",),
            vmem_limit_bytes=vmem_bytes,
        ),
    )(ids, lut)

    return out_flat[:n].reshape(batch, seq, d_model)


if __name__ == "__main__":
    batch, seq, d_model, vocab = 2, 8, 32, 64

    key = jax.random.PRNGKey(0)
    k_lut, k_ids = jax.random.split(key)

    # Deterministic synthetic parameters (nn.Embedding(vocab, d_model).weight).
    lut = jax.random.normal(k_lut, (vocab, d_model), dtype=jnp.float32)
    # Token ids (the module's forward input).
    x = jax.random.randint(k_ids, (batch, seq), 0, vocab, dtype=jnp.int32)

    out = embeddings_forward(x, lut)
    out = jax.block_until_ready(out)

    # Pure-JAX reference of the PyTorch semantics: lut(x) * sqrt(d_model)
    ref = lut[x] * math.sqrt(d_model)
    assert out.shape == (batch, seq, d_model)
    assert out.dtype == jnp.float32
    assert jnp.allclose(out, ref, atol=1e-5, rtol=1e-5)

    print("KERNEL_OK")
</pallas_src>

<mosaic_0001>
module attributes {stable_mosaic.version = 11 : i64} {
  func.func @_embed_gather_kernel(%arg0: i32, %arg1: memref<16xi32, #tpu.memory_space<smem>>, %arg2: memref<64x32xf32, #tpu.memory_space<any>>, %arg3: memref<8x32xf32, #tpu.memory_space<vmem>>, %arg4: memref<2x8x!tpu.dma_semaphore, #tpu.memory_space<semaphore_mem>>) attributes {dimension_semantics = [#tpu.dimension_semantics<parallel>], iteration_bounds = array<i64: 2>, scalar_prefetch = 1 : i64, scratch_operands = 1 : i64, tpu.core_type = #tpu.core_type<tc>, window_params = [{}, {transform_indices = @transform_1, window_bounds = array<i64: 8, 32>}]} {
    %c8_i32 = arith.constant 8 : i32
    %0 = arith.muli %arg0, %c8_i32 : i32
    %c0_i32 = arith.constant 0 : i32
    %1 = arith.addi %0, %c0_i32 : i32
    %c0_i32_0 = arith.constant 0 : i32
    %2 = arith.addi %1, %c0_i32_0 : i32
    %3 = arith.index_cast %2 : i32 to index
    %4 = memref.load %arg1[%3] : memref<16xi32, #tpu.memory_space<smem>>
    %c0_i32_1 = arith.constant 0 : i32
    %c63_i32 = arith.constant 63 : i32
    %5 = arith.maxsi %c0_i32_1, %4 : i32
    %6 = arith.minsi %c63_i32, %5 : i32
    %c0_i32_2 = arith.constant 0 : i32
    %c0_i32_3 = arith.constant 0 : i32
    %c0_i32_4 = arith.constant 0 : i32
    %7 = tpu.memref_slice %arg2[%6, %c0_i32_4] : memref<64x32xf32, #tpu.memory_space<any>> -> memref<1x32xf32, #tpu.memory_space<any>>
    %c0_i32_5 = arith.constant 0 : i32
    %c0_i32_6 = arith.constant 0 : i32
    %8 = tpu.memref_slice %arg3[%c0_i32_5, %c0_i32_6] : memref<8x32xf32, #tpu.memory_space<vmem>> -> memref<1x32xf32, #tpu.memory_space<vmem>>
    %9 = tpu.memref_slice %arg4[%c0_i32_2, %c0_i32_3] : memref<2x8x!tpu.dma_semaphore, #tpu.memory_space<semaphore_mem>> -> memref<1x1x!tpu.dma_semaphore, #tpu.memory_space<semaphore_mem>>
    %10 = tpu.memref_squeeze %9 : memref<1x1x!tpu.dma_semaphore, #tpu.memory_space<semaphore_mem>> -> memref<!tpu.dma_semaphore, #tpu.memory_space<semaphore_mem>>
    tpu.enqueue_dma source(%7 : memref<1x32xf32, #tpu.memory_space<any>>) target(%8 : memref<1x32xf32, #tpu.memory_space<vmem>>) target_semaphore(%10 : memref<!tpu.dma_semaphore, #tpu.memory_space<semaphore_mem>>)
    %c0_i32_7 = arith.constant 0 : i32
    %11 = arith.addi %0, %c0_i32_7 : i32
    %c1_i32 = arith.constant 1 : i32
    %12 = arith.addi %11, %c1_i32 : i32
    %13 = arith.index_cast %12 : i32 to index
    %14 = memref.load %arg1[%13] : memref<16xi32, #tpu.memory_space<smem>>
    %c0_i32_8 = arith.constant 0 : i32
    %c63_i32_9 = arith.constant 63 : i32
    %15 = arith.maxsi %c0_i32_8, %14 : i32
    %16 = arith.minsi %c63_i32_9, %15 : i32
    %c0_i32_10 = arith.constant 0 : i32
    %c1_i32_11 = arith.constant 1 : i32
    %c0_i32_12 = arith.constant 0 : i32
    %17 = tpu.memref_slice %arg2[%16, %c0_i32_12] : memref<64x32xf32, #tpu.memory_space<any>> -> memref<1x32xf32, #tpu.memory_space<any>>
    %c1_i32_13 = arith.constant 1 : i32
    %c0_i32_14 = arith.constant 0 : i32
    %18 = tpu.memref_slice %arg3[%c1_i32_13, %c0_i32_14] : memref<8x32xf32, #tpu.memory_space<vmem>> -> memref<1x32xf32, #tpu.memory_space<vmem>>
    %19 = tpu.memref_slice %arg4[%c0_i32_10, %c1_i32_11] : memref<2x8x!tpu.dma_semaphore, #tpu.memory_space<semaphore_mem>> -> memref<1x1x!tpu.dma_semaphore, #tpu.memory_space<semaphore_mem>>
    %20 = tpu.memref_squeeze %19 : memref<1x1x!tpu.dma_semaphore, #tpu.memory_space<semaphore_mem>> -> memref<!tpu.dma_semaphore, #tpu.memory_space<semaphore_mem>>
    tpu.enqueue_dma source(%17 : memref<1x32xf32, #tpu.memory_space<any>>) target(%18 : memref<1x32xf32, #tpu.memory_space<vmem>>) target_semaphore(%20 : memref<!tpu.dma_semaphore, #tpu.memory_space<semaphore_mem>>)
    %c0_i32_15 = arith.constant 0 : i32
    %21 = arith.addi %0, %c0_i32_15 : i32
    %c2_i32 = arith.constant 2 : i32
    %22 = arith.addi %21, %c2_i32 : i32
    %23 = arith.index_cast %22 : i32 to index
    %24 = memref.load %arg1[%23] : memref<16xi32, #tpu.memory_space<smem>>
    %c0_i32_16 = arith.constant 0 : i32
    %c63_i32_17 = arith.constant 63 : i32
    %25 = arith.maxsi %c0_i32_16, %24 : i32
    %26 = arith.minsi %c63_i32_17, %25 : i32
    %c0_i32_18 = arith.constant 0 : i32
    %c2_i32_19 = arith.constant 2 : i32
    %c0_i32_20 = arith.constant 0 : i32
    %27 = tpu.memref_slice %arg2[%26, %c0_i32_20] : memref<64x32xf32, #tpu.memory_space<any>> -> memref<1x32xf32, #tpu.memory_space<any>>
    %c2_i32_21 = arith.constant 2 : i32
    %c0_i32_22 = arith.constant 0 : i32
    %28 = tpu.memref_slice %arg3[%c2_i32_21, %c0_i32_22] : memref<8x32xf32, #tpu.memory_space<vmem>> -> memref<1x32xf32, #tpu.memory_space<vmem>>
    %29 = tpu.memref_slice %arg4[%c0_i32_18, %c2_i32_19] : memref<2x8x!tpu.dma_semaphore, #tpu.memory_space<semaphore_mem>> -> memref<1x1x!tpu.dma_semaphore, #tpu.memory_space<semaphore_mem>>
    %30 = tpu.memref_squeeze %29 : memref<1x1x!tpu.dma_semaphore, #tpu.memory_space<semaphore_mem>> -> memref<!tpu.dma_semaphore, #tpu.memory_space<semaphore_mem>>
    tpu.enqueue_dma source(%27 : memref<1x32xf32, #tpu.memory_space<any>>) target(%28 : memref<1x32xf32, #tpu.memory_space<vmem>>) target_semaphore(%30 : memref<!tpu.dma_semaphore, #tpu.memory_space<semaphore_mem>>)
    %c0_i32_23 = arith.constant 0 : i32
    %31 = arith.addi %0, %c0_i32_23 : i32
    %c3_i32 = arith.constant 3 : i32
    %32 = arith.addi %31, %c3_i32 : i32
    %33 = arith.index_cast %32 : i32 to index
    %34 = memref.load %arg1[%33] : memref<16xi32, #tpu.memory_space<smem>>
    %c0_i32_24 = arith.constant 0 : i32
    %c63_i32_25 = arith.constant 63 : i32
    %35 = arith.maxsi %c0_i32_24, %34 : i32
    %36 = arith.minsi %c63_i32_25, %35 : i32
    %c0_i32_26 = arith.constant 0 : i32
    %c3_i32_27 = arith.constant 3 : i32
    %c0_i32_28 = arith.constant 0 : i32
    %37 = tpu.memref_slice %arg2[%36, %c0_i32_28] : memref<64x32xf32, #tpu.memory_space<any>> -> memref<1x32xf32, #tpu.memory_space<any>>
    %c3_i32_29 = arith.constant 3 : i32
    %c0_i32_30 = arith.constant 0 : i32
    %38 = tpu.memref_slice %arg3[%c3_i32_29, %c0_i32_30] : memref<8x32xf32, #tpu.memory_space<vmem>> -> memref<1x32xf32, #tpu.memory_space<vmem>>
    %39 = tpu.memref_slice %arg4[%c0_i32_26, %c3_i32_27] : memref<2x8x!tpu.dma_semaphore, #tpu.memory_space<semaphore_mem>> -> memref<1x1x!tpu.dma_semaphore, #tpu.memory_space<semaphore_mem>>
    %40 = tpu.memref_squeeze %39 : memref<1x1x!tpu.dma_semaphore, #tpu.memory_space<semaphore_mem>> -> memref<!tpu.dma_semaphore, #tpu.memory_space<semaphore_mem>>
    tpu.enqueue_dma source(%37 : memref<1x32xf32, #tpu.memory_space<any>>) target(%38 : memref<1x32xf32, #tpu.memory_space<vmem>>) target_semaphore(%40 : memref<!tpu.dma_semaphore, #tpu.memory_space<semaphore_mem>>)
    %c0_i32_31 = arith.constant 0 : i32
    %41 = arith.addi %0, %c0_i32_31 : i32
    %c4_i32 = arith.constant 4 : i32
    %42 = arith.addi %41, %c4_i32 : i32
    %43 = arith.index_cast %42 : i32 to index
    %44 = memref.load %arg1[%43] : memref<16xi32, #tpu.memory_space<smem>>
    %c0_i32_32 = arith.constant 0 : i32
    %c63_i32_33 = arith.constant 63 : i32
    %45 = arith.maxsi %c0_i32_32, %44 : i32
    %46 = arith.minsi %c63_i32_33, %45 : i32
    %c0_i32_34 = arith.constant 0 : i32
    %c4_i32_35 = arith.constant 4 : i32
    %c0_i32_36 = arith.constant 0 : i32
    %47 = tpu.memref_slice %arg2[%46, %c0_i32_36] : memref<64x32xf32, #tpu.memory_space<any>> -> memref<1x32xf32, #tpu.memory_space<any>>
    %c4_i32_37 = arith.constant 4 : i32
    %c0_i32_38 = arith.constant 0 : i32
    %48 = tpu.memref_slice %arg3[%c4_i32_37, %c0_i32_38] : memref<8x32xf32, #tpu.memory_space<vmem>> -> memref<1x32xf32, #tpu.memory_space<vmem>>
    %49 = tpu.memref_slice %arg4[%c0_i32_34, %c4_i32_35] : memref<2x8x!tpu.dma_semaphore, #tpu.memory_space<semaphore_mem>> -> memref<1x1x!tpu.dma_semaphore, #tpu.memory_space<semaphore_mem>>
    %50 = tpu.memref_squeeze %49 : memref<1x1x!tpu.dma_semaphore, #tpu.memory_space<semaphore_mem>> -> memref<!tpu.dma_semaphore, #tpu.memory_space<semaphore_mem>>
    tpu.enqueue_dma source(%47 : memref<1x32xf32, #tpu.memory_space<any>>) target(%48 : memref<1x32xf32, #tpu.memory_space<vmem>>) target_semaphore(%50 : memref<!tpu.dma_semaphore, #tpu.memory_space<semaphore_mem>>)
    %c0_i32_39 = arith.constant 0 : i32
    %51 = arith.addi %0, %c0_i32_39 : i32
    %c5_i32 = arith.constant 5 : i32
    %52 = arith.addi %51, %c5_i32 : i32
    %53 = arith.index_cast %52 : i32 to index
    %54 = memref.load %arg1[%53] : memref<16xi32, #tpu.memory_space<smem>>
    %c0_i32_40 = arith.constant 0 : i32
    %c63_i32_41 = arith.constant 63 : i32
    %55 = arith.maxsi %c0_i32_40, %54 : i32
    %56 = arith.minsi %c63_i32_41, %55 : i32
    %c0_i32_42 = arith.constant 0 : i32
    %c5_i32_43 = arith.constant 5 : i32
    %c0_i32_44 = arith.constant 0 : i32
    %57 = tpu.memref_slice %arg2[%56, %c0_i32_44] : memref<64x32xf32, #tpu.memory_space<any>> -> memref<1x32xf32, #tpu.memory_space<any>>
    %c5_i32_45 = arith.constant 5 : i32
    %c0_i32_46 = arith.constant 0 : i32
    %58 = tpu.memref_slice %arg3[%c5_i32_45, %c0_i32_46] : memref<8x32xf32, #tpu.memory_space<vmem>> -> memref<1x32xf32, #tpu.memory_space<vmem>>
    %59 = tpu.memref_slice %arg4[%c0_i32_42, %c5_i32_43] : memref<2x8x!tpu.dma_semaphore, #tpu.memory_space<semaphore_mem>> -> memref<1x1x!tpu.dma_semaphore, #tpu.memory_space<semaphore_mem>>
    %60 = tpu.memref_squeeze %59 : memref<1x1x!tpu.dma_semaphore, #tpu.memory_space<semaphore_mem>> -> memref<!tpu.dma_semaphore, #tpu.memory_space<semaphore_mem>>
    tpu.enqueue_dma source(%57 : memref<1x32xf32, #tpu.memory_space<any>>) target(%58 : memref<1x32xf32, #tpu.memory_space<vmem>>) target_semaphore(%60 : memref<!tpu.dma_semaphore, #tpu.memory_space<semaphore_mem>>)
    %c0_i32_47 = arith.constant 0 : i32
    %61 = arith.addi %0, %c0_i32_47 : i32
    %c6_i32 = arith.constant 6 : i32
    %62 = arith.addi %61, %c6_i32 : i32
    %63 = arith.index_cast %62 : i32 to index
    %64 = memref.load %arg1[%63] : memref<16xi32, #tpu.memory_space<smem>>
    %c0_i32_48 = arith.constant 0 : i32
    %c63_i32_49 = arith.constant 63 : i32
    %65 = arith.maxsi %c0_i32_48, %64 : i32
    %66 = arith.minsi %c63_i32_49, %65 : i32
    %c0_i32_50 = arith.constant 0 : i32
    %c6_i32_51 = arith.constant 6 : i32
    %c0_i32_52 = arith.constant 0 : i32
    %67 = tpu.memref_slice %arg2[%66, %c0_i32_52] : memref<64x32xf32, #tpu.memory_space<any>> -> memref<1x32xf32, #tpu.memory_space<any>>
    %c6_i32_53 = arith.constant 6 : i32
    %c0_i32_54 = arith.constant 0 : i32
    %68 = tpu.memref_slice %arg3[%c6_i32_53, %c0_i32_54] : memref<8x32xf32, #tpu.memory_space<vmem>> -> memref<1x32xf32, #tpu.memory_space<vmem>>
    %69 = tpu.memref_slice %arg4[%c0_i32_50, %c6_i32_51] : memref<2x8x!tpu.dma_semaphore, #tpu.memory_space<semaphore_mem>> -> memref<1x1x!tpu.dma_semaphore, #tpu.memory_space<semaphore_mem>>
    %70 = tpu.memref_squeeze %69 : memref<1x1x!tpu.dma_semaphore, #tpu.memory_space<semaphore_mem>> -> memref<!tpu.dma_semaphore, #tpu.memory_space<semaphore_mem>>
    tpu.enqueue_dma source(%67 : memref<1x32xf32, #tpu.memory_space<any>>) target(%68 : memref<1x32xf32, #tpu.memory_space<vmem>>) target_semaphore(%70 : memref<!tpu.dma_semaphore, #tpu.memory_space<semaphore_mem>>)
    %c0_i32_55 = arith.constant 0 : i32
    %71 = arith.addi %0, %c0_i32_55 : i32
    %c7_i32 = arith.constant 7 : i32
    %72 = arith.addi %71, %c7_i32 : i32
    %73 = arith.index_cast %72 : i32 to index
    %74 = memref.load %arg1[%73] : memref<16xi32, #tpu.memory_space<smem>>
    %c0_i32_56 = arith.constant 0 : i32
    %c63_i32_57 = arith.constant 63 : i32
    %75 = arith.maxsi %c0_i32_56, %74 : i32
    %76 = arith.minsi %c63_i32_57, %75 : i32
    %c0_i32_58 = arith.constant 0 : i32
    %c7_i32_59 = arith.constant 7 : i32
    %c0_i32_60 = arith.constant 0 : i32
    %77 = tpu.memref_slice %arg2[%76, %c0_i32_60] : memref<64x32xf32, #tpu.memory_space<any>> -> memref<1x32xf32, #tpu.memory_space<any>>
    %c7_i32_61 = arith.constant 7 : i32
    %c0_i32_62 = arith.constant 0 : i32
    %78 = tpu.memref_slice %arg3[%c7_i32_61, %c0_i32_62] : memref<8x32xf32, #tpu.memory_space<vmem>> -> memref<1x32xf32, #tpu.memory_space<vmem>>
    %79 = tpu.memref_slice %arg4[%c0_i32_58, %c7_i32_59] : memref<2x8x!tpu.dma_semaphore, #tpu.memory_space<semaphore_mem>> -> memref<1x1x!tpu.dma_semaphore, #tpu.memory_space<semaphore_mem>>
    %80 = tpu.memref_squeeze %79 : memref<1x1x!tpu.dma_semaphore, #tpu.memory_space<semaphore_mem>> -> memref<!tpu.dma_semaphore, #tpu.memory_space<semaphore_mem>>
    tpu.enqueue_dma source(%77 : memref<1x32xf32, #tpu.memory_space<any>>) target(%78 : memref<1x32xf32, #tpu.memory_space<vmem>>) target_semaphore(%80 : memref<!tpu.dma_semaphore, #tpu.memory_space<semaphore_mem>>)
    %c0_i32_63 = arith.constant 0 : i32
    %c0_i32_64 = arith.constant 0 : i32
    %c0_i32_65 = arith.constant 0 : i32
    %c0_i32_66 = arith.constant 0 : i32
    %81 = tpu.memref_slice %arg2[%c0_i32_65, %c0_i32_66] : memref<64x32xf32, #tpu.memory_space<any>> -> memref<1x32xf32, #tpu.memory_space<any>>
    %c0_i32_67 = arith.constant 0 : i32
    %c0_i32_68 = arith.constant 0 : i32
    %82 = tpu.memref_slice %arg3[%c0_i32_67, %c0_i32_68] : memref<8x32xf32, #tpu.memory_space<vmem>> -> memref<1x32xf32, #tpu.memory_space<vmem>>
    %83 = tpu.memref_slice %arg4[%c0_i32_63, %c0_i32_64] : memref<2x8x!tpu.dma_semaphore, #tpu.memory_space<semaphore_mem>> -> memref<1x1x!tpu.dma_semaphore, #tpu.memory_space<semaphore_mem>>
    %84 = tpu.memref_squeeze %83 : memref<1x1x!tpu.dma_semaphore, #tpu.memory_space<semaphore_mem>> -> memref<!tpu.dma_semaphore, #tpu.memory_space<semaphore_mem>>
    tpu.wait_dma2 semaphore(%84 : memref<!tpu.dma_semaphore, #tpu.memory_space<semaphore_mem>>) src(%81 : memref<1x32xf32, #tpu.memory_space<any>>) dst(%82 : memref<1x32xf32, #tpu.memory_space<vmem>>)
    %c0_i32_69 = arith.constant 0 : i32
    %c1_i32_70 = arith.constant 1 : i32
    %c0_i32_71 = arith.constant 0 : i32
    %c0_i32_72 = arith.constant 0 : i32
    %85 = tpu.memref_slice %arg2[%c0_i32_71, %c0_i32_72] : memref<64x32xf32, #tpu.memory_space<any>> -> memref<1x32xf32, #tpu.memory_space<any>>
    %c1_i32_73 = arith.constant 1 : i32
    %c0_i32_74 = arith.constant 0 : i32
    %86 = tpu.memref_slice %arg3[%c1_i32_73, %c0_i32_74] : memref<8x32xf32, #tpu.memory_space<vmem>> -> memref<1x32xf32, #tpu.memory_space<vmem>>
    %87 = tpu.memref_slice %arg4[%c0_i32_69, %c1_i32_70] : memref<2x8x!tpu.dma_semaphore, #tpu.memory_space<semaphore_mem>> -> memref<1x1x!tpu.dma_semaphore, #tpu.memory_space<semaphore_mem>>
    %88 = tpu.memref_squeeze %87 : memref<1x1x!tpu.dma_semaphore, #tpu.memory_space<semaphore_mem>> -> memref<!tpu.dma_semaphore, #tpu.memory_space<semaphore_mem>>
    tpu.wait_dma2 semaphore(%88 : memref<!tpu.dma_semaphore, #tpu.memory_space<semaphore_mem>>) src(%85 : memref<1x32xf32, #tpu.memory_space<any>>) dst(%86 : memref<1x32xf32, #tpu.memory_space<vmem>>)
    %c0_i32_75 = arith.constant 0 : i32
    %c2_i32_76 = arith.constant 2 : i32
    %c0_i32_77 = arith.constant 0 : i32
    %c0_i32_78 = arith.constant 0 : i32
    %89 = tpu.memref_slice %arg2[%c0_i32_77, %c0_i32_78] : memref<64x32xf32, #tpu.memory_space<any>> -> memref<1x32xf32, #tpu.memory_space<any>>
    %c2_i32_79 = arith.constant 2 : i32
    %c0_i32_80 = arith.constant 0 : i32
    %90 = tpu.memref_slice %arg3[%c2_i32_79, %c0_i32_80] : memref<8x32xf32, #tpu.memory_space<vmem>> -> memref<1x32xf32, #tpu.memory_space<vmem>>
    %91 = tpu.memref_slice %arg4[%c0_i32_75, %c2_i32_76] : memref<2x8x!tpu.dma_semaphore, #tpu.memory_space<semaphore_mem>> -> memref<1x1x!tpu.dma_semaphore, #tpu.memory_space<semaphore_mem>>
    %92 = tpu.memref_squeeze %91 : memref<1x1x!tpu.dma_semaphore, #tpu.memory_space<semaphore_mem>> -> memref<!tpu.dma_semaphore, #tpu.memory_space<semaphore_mem>>
    tpu.wait_dma2 semaphore(%92 : memref<!tpu.dma_semaphore, #tpu.memory_space<semaphore_mem>>) src(%89 : memref<1x32xf32, #tpu.memory_space<any>>) dst(%90 : memref<1x32xf32, #tpu.memory_space<vmem>>)
    %c0_i32_81 = arith.constant 0 : i32
    %c3_i32_82 = arith.constant 3 : i32
    %c0_i32_83 = arith.constant 0 : i32
    %c0_i32_84 = arith.constant 0 : i32
    %93 = tpu.memref_slice %arg2[%c0_i32_83, %c0_i32_84] : memref<64x32xf32, #tpu.memory_space<any>> -> memref<1x32xf32, #tpu.memory_space<any>>
    %c3_i32_85 = arith.constant 3 : i32
    %c0_i32_86 = arith.constant 0 : i32
    %94 = tpu.memref_slice %arg3[%c3_i32_85, %c0_i32_86] : memref<8x32xf32, #tpu.memory_space<vmem>> -> memref<1x32xf32, #tpu.memory_space<vmem>>
    %95 = tpu.memref_slice %arg4[%c0_i32_81, %c3_i32_82] : memref<2x8x!tpu.dma_semaphore, #tpu.memory_space<semaphore_mem>> -> memref<1x1x!tpu.dma_semaphore, #tpu.memory_space<semaphore_mem>>
    %96 = tpu.memref_squeeze %95 : memref<1x1x!tpu.dma_semaphore, #tpu.memory_space<semaphore_mem>> -> memref<!tpu.dma_semaphore, #tpu.memory_space<semaphore_mem>>
    tpu.wait_dma2 semaphore(%96 : memref<!tpu.dma_semaphore, #tpu.memory_space<semaphore_mem>>) src(%93 : memref<1x32xf32, #tpu.memory_space<any>>) dst(%94 : memref<1x32xf32, #tpu.memory_space<vmem>>)
    %c0_i32_87 = arith.constant 0 : i32
    %c4_i32_88 = arith.constant 4 : i32
    %c0_i32_89 = arith.constant 0 : i32
    %c0_i32_90 = arith.constant 0 : i32
    %97 = tpu.memref_slice %arg2[%c0_i32_89, %c0_i32_90] : memref<64x32xf32, #tpu.memory_space<any>> -> memref<1x32xf32, #tpu.memory_space<any>>
    %c4_i32_91 = arith.constant 4 : i32
    %c0_i32_92 = arith.constant 0 : i32
    %98 = tpu.memref_slice %arg3[%c4_i32_91, %c0_i32_92] : memref<8x32xf32, #tpu.memory_space<vmem>> -> memref<1x32xf32, #tpu.memory_space<vmem>>
    %99 = tpu.memref_slice %arg4[%c0_i32_87, %c4_i32_88] : memref<2x8x!tpu.dma_semaphore, #tpu.memory_space<semaphore_mem>> -> memref<1x1x!tpu.dma_semaphore, #tpu.memory_space<semaphore_mem>>
    %100 = tpu.memref_squeeze %99 : memref<1x1x!tpu.dma_semaphore, #tpu.memory_space<semaphore_mem>> -> memref<!tpu.dma_semaphore, #tpu.memory_space<semaphore_mem>>
    tpu.wait_dma2 semaphore(%100 : memref<!tpu.dma_semaphore, #tpu.memory_space<semaphore_mem>>) src(%97 : memref<1x32xf32, #tpu.memory_space<any>>) dst(%98 : memref<1x32xf32, #tpu.memory_space<vmem>>)
    %c0_i32_93 = arith.constant 0 : i32
    %c5_i32_94 = arith.constant 5 : i32
    %c0_i32_95 = arith.constant 0 : i32
    %c0_i32_96 = arith.constant 0 : i32
    %101 = tpu.memref_slice %arg2[%c0_i32_95, %c0_i32_96] : memref<64x32xf32, #tpu.memory_space<any>> -> memref<1x32xf32, #tpu.memory_space<any>>
    %c5_i32_97 = arith.constant 5 : i32
    %c0_i32_98 = arith.constant 0 : i32
    %102 = tpu.memref_slice %arg3[%c5_i32_97, %c0_i32_98] : memref<8x32xf32, #tpu.memory_space<vmem>> -> memref<1x32xf32, #tpu.memory_space<vmem>>
    %103 = tpu.memref_slice %arg4[%c0_i32_93, %c5_i32_94] : memref<2x8x!tpu.dma_semaphore, #tpu.memory_space<semaphore_mem>> -> memref<1x1x!tpu.dma_semaphore, #tpu.memory_space<semaphore_mem>>
    %104 = tpu.memref_squeeze %103 : memref<1x1x!tpu.dma_semaphore, #tpu.memory_space<semaphore_mem>> -> memref<!tpu.dma_semaphore, #tpu.memory_space<semaphore_mem>>
    tpu.wait_dma2 semaphore(%104 : memref<!tpu.dma_semaphore, #tpu.memory_space<semaphore_mem>>) src(%101 : memref<1x32xf32, #tpu.memory_space<any>>) dst(%102 : memref<1x32xf32, #tpu.memory_space<vmem>>)
    %c0_i32_99 = arith.constant 0 : i32
    %c6_i32_100 = arith.constant 6 : i32
    %c0_i32_101 = arith.constant 0 : i32
    %c0_i32_102 = arith.constant 0 : i32
    %105 = tpu.memref_slice %arg2[%c0_i32_101, %c0_i32_102] : memref<64x32xf32, #tpu.memory_space<any>> -> memref<1x32xf32, #tpu.memory_space<any>>
    %c6_i32_103 = arith.constant 6 : i32
    %c0_i32_104 = arith.constant 0 : i32
    %106 = tpu.memref_slice %arg3[%c6_i32_103, %c0_i32_104] : memref<8x32xf32, #tpu.memory_space<vmem>> -> memref<1x32xf32, #tpu.memory_space<vmem>>
    %107 = tpu.memref_slice %arg4[%c0_i32_99, %c6_i32_100] : memref<2x8x!tpu.dma_semaphore, #tpu.memory_space<semaphore_mem>> -> memref<1x1x!tpu.dma_semaphore, #tpu.memory_space<semaphore_mem>>
    %108 = tpu.memref_squeeze %107 : memref<1x1x!tpu.dma_semaphore, #tpu.memory_space<semaphore_mem>> -> memref<!tpu.dma_semaphore, #tpu.memory_space<semaphore_mem>>
    tpu.wait_dma2 semaphore(%108 : memref<!tpu.dma_semaphore, #tpu.memory_space<semaphore_mem>>) src(%105 : memref<1x32xf32, #tpu.memory_space<any>>) dst(%106 : memref<1x32xf32, #tpu.memory_space<vmem>>)
    %c0_i32_105 = arith.constant 0 : i32
    %c7_i32_106 = arith.constant 7 : i32
    %c0_i32_107 = arith.constant 0 : i32
    %c0_i32_108 = arith.constant 0 : i32
    %109 = tpu.memref_slice %arg2[%c0_i32_107, %c0_i32_108] : memref<64x32xf32, #tpu.memory_space<any>> -> memref<1x32xf32, #tpu.memory_space<any>>
    %c7_i32_109 = arith.constant 7 : i32
    %c0_i32_110 = arith.constant 0 : i32
    %110 = tpu.memref_slice %arg3[%c7_i32_109, %c0_i32_110] : memref<8x32xf32, #tpu.memory_space<vmem>> -> memref<1x32xf32, #tpu.memory_space<vmem>>
    %111 = tpu.memref_slice %arg4[%c0_i32_105, %c7_i32_106] : memref<2x8x!tpu.dma_semaphore, #tpu.memory_space<semaphore_mem>> -> memref<1x1x!tpu.dma_semaphore, #tpu.memory_space<semaphore_mem>>
    %112 = tpu.memref_squeeze %111 : memref<1x1x!tpu.dma_semaphore, #tpu.memory_space<semaphore_mem>> -> memref<!tpu.dma_semaphore, #tpu.memory_space<semaphore_mem>>
    tpu.wait_dma2 semaphore(%112 : memref<!tpu.dma_semaphore, #tpu.memory_space<semaphore_mem>>) src(%109 : memref<1x32xf32, #tpu.memory_space<any>>) dst(%110 : memref<1x32xf32, #tpu.memory_space<vmem>>)
    %c0 = arith.constant 0 : index
    %c0_111 = arith.constant 0 : index
    %113 = vector.load %arg3[%c0, %c0_111] : memref<8x32xf32, #tpu.memory_space<vmem>>, vector<8x32xf32>
    %cst = arith.constant 5.65685415 : f32
    %114 = vector.broadcast %cst : f32 to vector<8x32xf32>
    %115 = arith.mulf %113, %114 : vector<8x32xf32>
    %c0_112 = arith.constant 0 : index
    %c0_113 = arith.constant 0 : index
    %116 = vector.load %arg3[%c0_112, %c0_113] : memref<8x32xf32, #tpu.memory_space<vmem>>, vector<8x32xf32>
    tpu.vector_store %arg3[%c0_112, %c0_113], %115 {strides = array<i32>} : memref<8x32xf32, #tpu.memory_space<vmem>>, vector<8x32xf32>,
    return
  }
  func.func @transform_1(%arg0: i32, %arg1: memref<16xi32, #tpu.memory_space<smem>>) -> (i32, i32) {
    %c0_i32 = arith.constant 0 : i32
    %c0_i32_0 = arith.constant 0 : i32
    return %arg0, %c0_i32 : i32, i32
  }
}

</mosaic_0001>

<bundles_post_ra>
// kernel: tpu_custom_call.1
= control target key start
LH: loop header
LB: loop body
LE: loop exit
PB: predicated region body
PF: predicated region fallthrough
CT: control target
= control target key end

     0   :  { %s1126_s0 = inlined_call_operand.vmem [shape: s32[16], index: 0, kind: input, shape index: {}]   ;;  %s1127_s1 = inlined_call_operand.vmem [shape: f32[64,32], index: 1, kind: input, shape index: {}]   ;;  %s1128_s2 = inlined_call_operand.hbm [shape: f32[16,32], index: 2, kind: output, shape index: {}]  }
   0x1   :  { %s7_s11 = sshll.u32 %s1126_s0, 4  ;;  %s8_s11 = int_to_ptr.vmem [resolvable:$true] %s7_s11 }
   0x2   :  { %s887_s12 = scalar_lea.vmem %s8_s11, 16  ;;  %p892_p1 = scmp.lt.s32.totalorder %s8_s11, %s8_s11 }
   0x3   :  { %p888_p0 = scmp.ne.s32.totalorder %s8_s11, %s887_s12  ;;  %p893_p2 = scmp.lt.s32.totalorder %s887_s12, %s887_s12 }
   0x5   :  { %p894_p3 = por %p893_p2, %p892_p1 }
   0x7   :  { %p895_p4 = pnand %p894_p3, %p888_p0 }
   0x9   :  { %898 = shalt.err (!%p895_p4)  }
   0xa   :  { %s973_s13 = smov [#allocation4]  }
   0xb   :  { %10 = dma.vmem_to_smem %s8_s11, 16, %s973_s13, [#allocation3] }
   0xc   :  { %939 = dma.done.wait [#allocation3], 16 }
   0xd   :  { %940 = vsyncadd [#allocation3], 4294967280 }
   0xe   :  { %12 = sfence }
   0xf   :  { %13 = vsyncpa [#allocation6], 0 }
  0x10   :  { %15 = vsyncpa [#allocation6 + $0x1], 0  ;;  %s993_s14 = smov 0   ;;  %s995_s15 = smov 0  }
  0x11   :  { %s997_s0 = smov 0  }
  0x12 LB: > { %s760_s16 = sadd.s32 4294967295, %s971_s0   ;;  %s1010_s17 = sadd.s32 1, %s971_s0   ;;  %s971_s0 = sphi %s997_s0, %s1133_s0   ;;  %s967_s15 = sphi %s995_s15, %s1132_s15   ;;  %s963_s14 = sphi %s993_s14, %s1131_s14  }
  0x13   : > { %s24_s18 = ssub.s32 %s971_s0, %s1010_s17  ;;  %s27_s19 = sadd.s32 1, %s967_s15 }
  0x14   : > { %p25_p5 = scmp.eq.s32.totalorder %s24_s18, 0  ;;  %p761_p6 = scmp.ne.s32.totalorder %s24_s18, 0 }
  0x15   : > { %p31_p7 = scmp.eq.s32.totalorder %s971_s0, 1  ;;  %p36_p8 = scmp.ne.s32.totalorder %s967_s15, %s963_s14 }
  0x16   : > { %s1019_s20 = scalar_select %p25_p5, %s967_s15, %s27_s19  }
  0x17   : > { %p1021_p9 = por %p761_p6, %p31_p7  ;;  %p37_p10 = scmp.eq.s32.totalorder %s760_s16, 1 }
  0x18   : > { %p762_p12 = scmp.ge.s32.totalorder %s971_s0, 2 }
  0x19   : > { %p1025_p11 = por %p37_p10, %p36_p8  ;;  %s1031_s23 = sshll.u32 (!%p762_p12), %s971_s0, 3 }
  0x1a   : > { %46 = sbr.rel (%p762_p12) target bundleno = 177 (0xb1), region = 12  ;;  %s55_s24 = sld [smem:[#allocation4 + %s1031_s23]] (!%p762_p12) }
  0x1b   : > { %s51_s25 = sand.u32 (!%p762_p12), 1, %s967_s15  }
  0x1c   : > { %s763_s26 = sshll.u32 (!%p762_p12), %s51_s25, 3 }
  0x1d   : > { %s1040_s30 = scalar_lea.vmem (!%p762_p12), [#allocation5], %s763_s26 }
  0x20   : > { %p56_p13 = scmp.gt.s32.totalorder (!%p762_p12), %s55_s24, 0  ;;  %p765_p0 = scmp.lt.s32.totalorder (!%p762_p12), %s55_s24, 63 }
  0x22   : > { %s1135_s24 = smov (!%p56_p13, %s55_s24), 0 }
  0x23   : > { %s1137_s24 = smov (!%p765_p0, %s1135_s24), 63 }
  0x24   : > { %s60_s29 = scalar_lea.vmem %s1127_s1, %s1137_s24 }
  0x25   : > { %v78_v0 = vld [vmem:[%s60_s29] sm:$0x1] }
  0x26   : > { %79 = vst [vmem:[%s1040_s30] sm:$0x1] %v78_v0 }
  0x27   : > { %104 = vsyncadd [#allocation2], 16  ;;  %s105_s3 = sadd.s32 1, %s1031_s23 }
  0x28   : > { %s106_s4 = sld [smem:[#allocation4 + %s105_s3]] }
  0x2e   : > { %p107_p1 = scmp.gt.s32.totalorder %s106_s4, 0  ;;  %p770_p2 = scmp.lt.s32.totalorder %s106_s4, 63 }
  0x30   : > { %s1139_s4 = smov (!%p107_p1, %s106_s4), 0 }
  0x31   : > { %s1141_s4 = smov (!%p770_p2, %s1139_s4), 63 }
  0x32   : > { %s111_s7 = scalar_lea.vmem %s1127_s1, %s1141_s4 }
  0x33   : > { %v131_v1 = vld [vmem:[%s111_s7] sm:$0x1] }
  0x34   : > { %776 = vst [vmem:[%s1040_s30 + $0x1] sm:$0x1] %v131_v1 }
  0x35   : > { %157 = vsyncadd [#allocation2 + $0x1], 16  ;;  %s158_s8 = sadd.s32 2, %s1031_s23 }
  0x36   : > { %s159_s9 = sld [smem:[#allocation4 + %s158_s8]] }
  0x3c   : > { %p160_p3 = scmp.gt.s32.totalorder %s159_s9, 0  ;;  %p777_p4 = scmp.lt.s32.totalorder %s159_s9, 63 }
  0x3e   : > { %s1143_s9 = smov (!%p160_p3, %s159_s9), 0 }
  0x3f   : > { %s1145_s9 = smov (!%p777_p4, %s1143_s9), 63 }
  0x40   : > { %s164_s12 = scalar_lea.vmem %s1127_s1, %s1145_s9 }
  0x41   : > { %v184_v2 = vld [vmem:[%s164_s12] sm:$0x1] }
  0x42   : > { %783 = vst [vmem:[%s1040_s30 + $0x2] sm:$0x1] %v184_v2 }
  0x43   : > { %210 = vsyncadd [#allocation2 + $0x2], 16  ;;  %s211_s13 = sadd.s32 3, %s1031_s23 }
  0x44   : > { %s212_s16 = sld [smem:[#allocation4 + %s211_s13]] }
  0x4a   : > { %p213_p5 = scmp.gt.s32.totalorder %s212_s16, 0  ;;  %p784_p6 = scmp.lt.s32.totalorder %s212_s16, 63 }
  0x4c   : > { %s1147_s16 = smov (!%p213_p5, %s212_s16), 0 }
  0x4d   : > { %s1149_s16 = smov (!%p784_p6, %s1147_s16), 63 }
  0x4e   : > { %s217_s24 = scalar_lea.vmem %s1127_s1, %s1149_s16 }
  0x4f   : > { %v237_v3 = vld [vmem:[%s217_s24] sm:$0x1] }
  0x50   : > { %790 = vst [vmem:[%s1040_s30 + $0x3] sm:$0x1] %v237_v3 }
  0x51   : > { %263 = vsyncadd [#allocation2 + $0x3], 16  ;;  %s264_s26 = sadd.s32 4, %s1031_s23 }
  0x52   : > { %s265_s27 = sld [smem:[#allocation4 + %s264_s26]] }
  0x58   : > { %p266_p7 = scmp.gt.s32.totalorder %s265_s27, 0  ;;  %p791_p8 = scmp.lt.s32.totalorder %s265_s27, 63 }
  0x5a   : > { %s1151_s27 = smov (!%p266_p7, %s265_s27), 0 }
  0x5b   : > { %s1153_s27 = smov (!%p791_p8, %s1151_s27), 63 }
  0x5c   : > { %s270_s3 = scalar_lea.vmem %s1127_s1, %s1153_s27 }
  0x5d   : > { %v290_v4 = vld [vmem:[%s270_s3] sm:$0x1] }
  0x5e   : > { %797 = vst [vmem:[%s1040_s30 + $0x4] sm:$0x1] %v290_v4 }
  0x5f   : > { %316 = vsyncadd [#allocation2 + $0x4], 16  ;;  %s317_s4 = sadd.s32 5, %s1031_s23 }
  0x60   : > { %s318_s5 = sld [smem:[#allocation4 + %s317_s4]] }
  0x66   : > { %p319_p10 = scmp.gt.s32.totalorder %s318_s5, 0  ;;  %p798_p12 = scmp.lt.s32.totalorder %s318_s5, 63 }
  0x68   : > { %s1155_s5 = smov (!%p319_p10, %s318_s5), 0 }
  0x69   : > { %s1157_s5 = smov (!%p798_p12, %s1155_s5), 63 }
  0x6a   : > { %s323_s8 = scalar_lea.vmem %s1127_s1, %s1157_s5 }
  0x6b   : > { %v343_v5 = vld [vmem:[%s323_s8] sm:$0x1] }
  0x6c   : > { %804 = vst [vmem:[%s1040_s30 + $0x5] sm:$0x1] %v343_v5 }
  0x6d   : > { %369 = vsyncadd [#allocation2 + $0x5], 16  ;;  %s370_s9 = sadd.s32 6, %s1031_s23 }
  0x6e   : > { %s371_s10 = sld [smem:[#allocation4 + %s370_s9]] }
  0x74   : > { %p372_p13 = scmp.gt.s32.totalorder %s371_s10, 0  ;;  %p805_p0 = scmp.lt.s32.totalorder %s371_s10, 63 }
  0x76   : > { %s1159_s10 = smov (!%p372_p13, %s371_s10), 0 }
  0x77   : > { %s1161_s10 = smov (!%p805_p0, %s1159_s10), 63 }
  0x78   : > { %s376_s13 = scalar_lea.vmem %s1127_s1, %s1161_s10 }
  0x79   : > { %v396_v6 = vld [vmem:[%s376_s13] sm:$0x1] }
  0x7a   : > { %811 = vst [vmem:[%s1040_s30 + $0x6] sm:$0x1] %v396_v6 }
  0x7b   : > { %422 = vsyncadd [#allocation2 + $0x6], 16  ;;  %s423_s16 = sadd.s32 7, %s1031_s23 }
  0x7c   : > { %s424_s18 = sld [smem:[#allocation4 + %s423_s16]] }
  0x82   : > { %p425_p1 = scmp.gt.s32.totalorder %s424_s18, 0  ;;  %p812_p2 = scmp.lt.s32.totalorder %s424_s18, 63 }
  0x84   : > { %s1163_s18 = smov (!%p425_p1, %s424_s18), 0 }
  0x85   : > { %s1165_s18 = smov (!%p812_p2, %s1163_s18), 63 }
  0x86   : > { %s429_s26 = scalar_lea.vmem %s1127_s1, %s1165_s18 }
  0x87   : > { %v449_v7 = vld [vmem:[%s429_s26] sm:$0x1] }
  0x88   : > { %818 = vst [vmem:[%s1040_s30 + $0x7] sm:$0x1] %v449_v7 }
  0x89   : > { %475 = vsyncadd [#allocation2 + $0x7], 16 }
  0x8a   : > { %941 = dma.done.wait [#allocation2], 16 }
  0x8b   : > { %942 = vsyncadd [#allocation2], 4294967280 }
  0x8c   : > { %943 = dma.done.wait [#allocation2 + $0x1], 16 }
  0x8d   : > { %944 = vsyncadd [#allocation2 + $0x1], 4294967280 }
  0x8e   : > { %945 = dma.done.wait [#allocation2 + $0x2], 16 }
  0x8f   : > { %946 = vsyncadd [#allocation2 + $0x2], 4294967280 }
  0x90   : > { %947 = dma.done.wait [#allocation2 + $0x3], 16 }
  0x91   : > { %948 = vsyncadd [#allocation2 + $0x3], 4294967280 }
  0x92   : > { %949 = dma.done.wait [#allocation2 + $0x4], 16 }
  0x93   : > { %950 = vsyncadd [#allocation2 + $0x4], 4294967280 }
  0x94   : > { %951 = dma.done.wait [#allocation2 + $0x5], 16 }
  0x95   : > { %952 = vsyncadd [#allocation2 + $0x5], 4294967280 }
  0x96   : > { %953 = dma.done.wait [#allocation2 + $0x6], 16 }
  0x97   : > { %954 = vsyncadd [#allocation2 + $0x6], 4294967280 }
  0x98   : > { %955 = dma.done.wait [#allocation2 + $0x7], 16 }
  0x99   : > { %956 = vsyncadd [#allocation2 + $0x7], 4294967280  ;;  %s820_s23 = sshll.u32 %s971_s0, 7  ;;  %s511_s27 = sshll.u32 %s1040_s30, 4  ;;  %v493_v8 = vld [vmem:[%s1040_s30] sm:$0xff]  ;;  %vm495_vm0 = vcmask 261120   ;;  %s1086_s27 = int_to_ptr.vmem [resolvable:$true] %s511_s27 }
  0x9a   : > { %v494_v9 = vmul.f32 5.656854, %v493_v8  ;;  %s1084_s3 = scalar_lea.hbm %s1128_s2, %s820_s23  ;;  %s498_s4 = scalar_lea.sflag [#allocation6], %s51_s25 }
  0x9b   : > { %s899_s5 = scalar_lea.vmem %s1086_s27, 128  ;;  %s974_s6 = smov [#allocation5]  }
  0x9c   : > { %496 = vst.msk [vmem:[%s1040_s30] sm:$0xff] %vm495_vm0, %v494_v9  ;;  %p900_p3 = scmp.ne.s32.totalorder %s1086_s27, %s899_s5  ;;  %s903_s7 = sshll.u32 %s974_s6, 4  ;;  %s904_s7 = int_to_ptr.vmem [resolvable:$false] %s903_s7 }
  0x9d   : > { %s905_s8 = scalar_lea.vmem %s904_s7, 256  ;;  %p906_p6 = scmp.lt.s32.totalorder %s1086_s27, %s904_s7 }
  0x9e   : > { %p901_p4 = pnand %p900_p3, %p1021_p9  ;;  %p907_p7 = scmp.lt.s32.totalorder %s905_s8, %s899_s5 }
  0xa0   : > { %p902_p5 = pneg %p901_p4  ;;  %p908_p8 = por %p907_p7, %p906_p6 }
  0xa2   : > { %p909_p10 = pnand %p908_p8, %p902_p5 }
  0xa4   : > { %912 = shalt.err (!%p909_p10)
}
  0xa5   : > { %s913_s25 = scalar_lea.hbm %s1084_s3, 128  ;;  %s917_s10 = scalar_lea.hbm %s1128_s2, 256 }
  0xa6   : > { %p914_p12 = scmp.ne.s32.totalorder %s1084_s3, %s913_s25  ;;  %p918_p1 = scmp.lt.u32.totalorder %s1084_s3, %s1128_s2 }
  0xa7   : > { %p919_p2 = scmp.lt.u32.totalorder %s917_s10, %s913_s25  ;;  %p921_p4 = scmp.lt.u32.totalorder %s913_s25, %s1084_s3 }
  0xa8   : > { %p915_p13 = pnand %p914_p12, %p1021_p9 }
  0xa9   : > { %p920_p3 = por %p919_p2, %p918_p1 }
  0xaa   : > { %p916_p0 = pneg %p915_p13 }
  0xab   : > { %p922_p5 = por %p921_p4, %p920_p3 }
  0xad   : > { %p923_p6 = pnand %p922_p5, %p916_p0 }
  0xaf   : > { %926 = shalt.err (!%p923_p6)
}
  0xb0   : > { %855 = dma.vmem_to_hbm [thread:$0]  (%p1021_p9), %s1086_s27, 128, %s1084_s3, %s498_s4  }
  0xb1 PF: > { %p861_p7 = scmp.ge.s32.totalorder %s971_s0, 1  ;;  %s523_s13 = sand.u32 1, %s963_s14  }
  0xb2   : > { %s524_s16 = scalar_lea.sflag [#allocation6], %s523_s13 }
  0xb3   : > { %p858_p8 = pnand %p861_p7, %p1025_p11 }
  0xb5   : > { %958 = dma.done.wait (!%p858_p8), %s524_s16, 128  }
  0xb6   : > { %960 = vsyncadd (!%p858_p8), %s524_s16, 4294967168  ;;  %p18_p10 = scmp.ge.s32.totalorder %s1010_s17, 3   ;;  %s1131_s14 = smov %s967_s15 }
  0xb7   : > { %s1132_s15 = smov %s1019_s20  ;;  %s1133_s0 = smov %s1010_s17 }
  0xb8   :  { %20 = sbr.rel (!%p18_p10) target bundleno = 18 (0x12), region = 401 }
  0xbf   :  { %529 = vsyncpa [#allocation6], 1 }
  0xc0   :  { %531 = vsyncpa [#allocation6 + $0x1], 1 }
  0xc1   :  { %532 = vsyncmov [#allocation2] }
  0xc4   :  { %s533_s0 = vpop.sfrf %532 }
  0xc5   :  { %p823_p9 = scmp.ne.s32.totalorder %s533_s0, 0 }
  0xc7   :  { %537 = shalt.err (%p823_p9)  }
  0xc8   :  { %539 = vsyncmov [#allocation2 + $0x1] }
  0xcb   :  { %s540_s21 = vpop.sfrf %539 }
  0xcc   :  { %p824_p11 = scmp.ne.s32.totalorder %s540_s21, 0 }
  0xce   :  { %544 = shalt.err (%p824_p11)  }
  0xcf   :  { %546 = vsyncmov [#allocation2 + $0x2] }
  0xd2   :  { %s547_s22 = vpop.sfrf %546 }
  0xd3   :  { %p825_p12 = scmp.ne.s32.totalorder %s547_s22, 0 }
  0xd5   :  { %551 = shalt.err (%p825_p12)  }
  0xd6   :  { %553 = vsyncmov [#allocation2 + $0x3] }
  0xd9   :  { %s554_s18 = vpop.sfrf %553 }
  0xda   :  { %p826_p13 = scmp.ne.s32.totalorder %s554_s18, 0 }
  0xdc   :  { %558 = shalt.err (%p826_p13)  }
  0xdd   :  { %560 = vsyncmov [#allocation2 + $0x4] }
  0xe0   :  { %s561_s17 = vpop.sfrf %560 }
  0xe1   :  { %p827_p0 = scmp.ne.s32.totalorder %s561_s17, 0 }
  0xe3   :  { %565 = shalt.err (%p827_p0)  }
  0xe4   :  { %567 = vsyncmov [#allocation2 + $0x5] }
  0xe7   :  { %s568_s1 = vpop.sfrf %567 }
  0xe8   :  { %p828_p1 = scmp.ne.s32.totalorder %s568_s1, 0 }
  0xea   :  { %572 = shalt.err (%p828_p1)  }
  0xeb   :  { %574 = vsyncmov [#allocation2 + $0x6] }
  0xee   :  { %s575_s2 = vpop.sfrf %574 }
  0xef   :  { %p829_p2 = scmp.ne.s32.totalorder %s575_s2, 0 }
  0xf1   :  { %579 = shalt.err (%p829_p2)  }
  0xf2   :  { %581 = vsyncmov [#allocation2 + $0x7] }
  0xf5   :  { %s582_s14 = vpop.sfrf %581 }
  0xf6   :  { %p830_p3 = scmp.ne.s32.totalorder %s582_s14, 0 }
  0xf8   :  { %586 = shalt.err (%p830_p3)  }
  0xf9   :  { %588 = vsyncmov [#allocation2 + $0x8] }
  0xfc   :  { %s589_s15 = vpop.sfrf %588 }
  0xfd   :  { %p831_p4 = scmp.ne.s32.totalorder %s589_s15, 0 }
  0xff   :  { %593 = shalt.err (%p831_p4)  }
 0x100   :  { %595 = vsyncmov [#allocation2 + $0x9] }
 0x103   :  { %s596_s20 = vpop.sfrf %595 }
 0x104   :  { %p832_p5 = scmp.ne.s32.totalorder %s596_s20, 0 }
 0x106   :  { %600 = shalt.err (%p832_p5)  }
 0x107   :  { %602 = vsyncmov [#allocation2 + $0xa] }
 0x10a   :  { %s603_s19 = vpop.sfrf %602 }
 0x10b   :  { %p833_p6 = scmp.ne.s32.totalorder %s603_s19, 0 }
 0x10d   :  { %607 = shalt.err (%p833_p6)  }
 0x10e   :  { %609 = vsyncmov [#allocation2 + $0xb] }
 0x111   :  { %s610_s24 = vpop.sfrf %609 }
 0x112   :  { %p834_p7 = scmp.ne.s32.totalorder %s610_s24, 0 }
 0x114   :  { %614 = shalt.err (%p834_p7)  }
 0x115   :  { %616 = vsyncmov [#allocation2 + $0xc] }
 0x118   :  { %s617_s26 = vpop.sfrf %616 }
 0x119   :  { %p835_p8 = scmp.ne.s32.totalorder %s617_s26, 0 }
 0x11b   :  { %621 = shalt.err (%p835_p8)  }
 0x11c   :  { %623 = vsyncmov [#allocation2 + $0xd] }
 0x11f   :  { %s624_s23 = vpop.sfrf %623 }
 0x120   :  { %p836_p10 = scmp.ne.s32.totalorder %s624_s23, 0 }
 0x122   :  { %628 = shalt.err (%p836_p10)  }
 0x123   :  { %630 = vsyncmov [#allocation2 + $0xe] }
 0x126   :  { %s631_s27 = vpop.sfrf %630 }
 0x127   :  { %p837_p9 = scmp.ne.s32.totalorder %s631_s27, 0 }
 0x129   :  { %635 = shalt.err (%p837_p9)  }
 0x12a   :  { %637 = vsyncmov [#allocation2 + $0xf] }
 0x12d   :  { %s638_s28 = vpop.sfrf %637 }
 0x12e   :  { %p838_p11 = scmp.ne.s32.totalorder %s638_s28, 0 }
 0x130   :  { %642 = shalt.err (%p838_p11)  }

</bundles_post_ra>
